<compile_context>
chip_gen: v6e
topology: v6e:2x2x1
jax: 0.10.0
libtpu: 0.0.40
codegen_flags: <defaults>
</compile_context>

<pallas_src>
import math
import functools

import jax
import jax.numpy as jnp
from jax import lax
from jax.experimental import pallas as pl
from jax.experimental.pallas import tpu as pltpu

_NEG_INF = -1e30  # finite mask fill keeps exp/softmax NaN-free for fully-masked rows

# Only lowering / argument errors trigger the double-buffered-weights fallback;
# RuntimeError (e.g. real VMEM OOM) propagates so it is never silently swallowed.
_FALLBACK_ERRORS = (TypeError, ValueError, NotImplementedError, pltpu.LoweringException)
_SINGLE_BUFFER_WEIGHTS = None  # decided once on first call


def _attn_kernel(valid_ref,          # scalar-prefetch: (B,) int32 in SMEM
                 x_ref,              # (R, E)   input dtype, R = Bb*T rows
                 wqkv_ref,           # (E, 3E)  bf16, q-scale folded in
                 bqkv_ref,           # (1, 3E)  f32,  q-scale folded in
                 wo_ref,             # (E, E)   bf16
                 bo_ref,             # (1, E)   f32
                 o_ref,              # (R, E)   output dtype
                 qkv_ref,            # scratch: (R, 3E) bf16
                 ctx_ref,            # scratch: (R, E)  bf16
                 *, n_head: int, head_dim: int, seq_len: int, batch_block: int):
    blk = pl.program_id(0)
    D = head_dim
    T = seq_len
    Bb = batch_block
    E = n_head * D

    # ---- fused QKV: one (R, E) x (E, 3E) bf16 MXU matmul, f32 accumulate ----
    xb = x_ref[...].astype(jnp.bfloat16)
    qkv = jnp.dot(xb, wqkv_ref[...], preferred_element_type=jnp.float32) + bqkv_ref[...]
    qkv_ref[...] = qkv.astype(jnp.bfloat16)   # cast once; per-head slices read bf16

    # ---- per-batch-in-block attention into the ctx scratch ----
    def batch_body(b, carry):
        row = pl.multiple_of(b * T, T)
        valid = valid_ref[blk * Bb + b]
        # key-position mask as a (1, T) bias row; sublane broadcast handles the add
        key_bias = jnp.where(
            lax.broadcasted_iota(jnp.int32, (1, T), 1) < valid,
            0.0, _NEG_INF).astype(jnp.float32)

        # n_head is small -> static unroll; the fori_loop over batches bounds the
        # live working set as Bb grows.
        for h in range(n_head):
            c0 = h * D
            qh = qkv_ref[pl.ds(row, T), pl.ds(c0, D)]              # (T, D) bf16 (scaled)
            kh = qkv_ref[pl.ds(row, T), pl.ds(E + c0, D)]
            vh = qkv_ref[pl.ds(row, T), pl.ds(2 * E + c0, D)]

            # q @ k^T contracting last dims (no explicit transpose; if the Mosaic dump
            # ever shows a vxpose here, switch to pl.dot(qh, kh, trans_b=True)).
            s = lax.dot_general(qh, kh, (((1,), (1,)), ((), ())),
                                preferred_element_type=jnp.float32)  # (T, T) f32
            s = s + key_bias

            # numerically-stable softmax in f32; reciprocal on the EUP is ~free
            m = jnp.max(s, axis=-1, keepdims=True)
            e = jnp.exp(s - m)
            p = e * pl.reciprocal(jnp.sum(e, axis=-1, keepdims=True), approx=True)

            ctx = jnp.dot(p.astype(jnp.bfloat16), vh,
                          preferred_element_type=jnp.float32)        # (T, D) f32
            ctx_ref[pl.ds(row, T), pl.ds(c0, D)] = ctx.astype(jnp.bfloat16)
        return carry

    lax.fori_loop(0, Bb, batch_body, 0, unroll=(Bb <= 2))

    # ---- single output projection for all rows & heads: (R, E) x (E, E) ----
    y = jnp.dot(ctx_ref[...], wo_ref[...], preferred_element_type=jnp.float32)
    o_ref[...] = (y + bo_ref[...]).astype(o_ref.dtype)


def _choose_batch_block(B, T, target_rows=256):
    """Largest divisor Bb of B with Bb*T <= target_rows, preferring >=2 grid steps."""
    divisors = [d for d in range(1, B + 1) if B % d == 0]
    cands = [d for d in divisors if B // d >= 2] or divisors
    fit = [d for d in cands if d * T <= target_rows]
    return max(fit) if fit else min(cands)


def causal_self_attention(x, params, valid_nums=None, *, n_head):
    """x: (B, T, E) float32; valid_nums: (B,) int32 or None. Dropout = identity."""
    global _SINGLE_BUFFER_WEIGHTS
    B, T, E = x.shape
    assert E % n_head == 0
    D = E // n_head
    if valid_nums is None:
        valid_nums = jnp.full((B,), T, dtype=jnp.int32)
    valid_nums = valid_nums.astype(jnp.int32)

    scale = 1.0 / math.sqrt(D)

    # nn.Linear stores weight as (out, in); transpose to (in, out) so y = x @ W + b.
    # Fold the 1/sqrt(D) attention scale into the Q columns / Q bias.
    wq = jnp.asarray(params["w_q"]["weight"]).T * scale
    wk = jnp.asarray(params["w_k"]["weight"]).T
    wv = jnp.asarray(params["w_v"]["weight"]).T
    bq = jnp.asarray(params["w_q"]["bias"]) * scale
    bk = jnp.asarray(params["w_k"]["bias"])
    bv = jnp.asarray(params["w_v"]["bias"])

    w_qkv = jnp.concatenate([wq, wk, wv], axis=1).astype(jnp.bfloat16)          # (E, 3E)
    b_qkv = jnp.concatenate([bq, bk, bv]).reshape(1, 3 * E).astype(jnp.float32)
    w_o = jnp.asarray(params["w_o"]["weight"]).T.astype(jnp.bfloat16)            # (E, E)
    b_o = jnp.asarray(params["w_o"]["bias"]).reshape(1, E).astype(jnp.float32)

    Bb = _choose_batch_block(B, T)      # batch elements per grid step
    R = Bb * T                          # MXU M-dim per step
    n_blocks = B // Bb

    x2 = x.reshape(B * T, E)            # flatten so each block is a (R, E) row slab

    kernel = functools.partial(_attn_kernel, n_head=n_head, head_dim=D,
                               seq_len=T, batch_block=Bb)
    args = (valid_nums, x2, w_qkv, b_qkv, w_o, b_o)

    # Advisory cost estimate for XLA's scheduler around the custom call.
    flops = 8 * B * T * E * E + 4 * B * n_head * T * T * D
    transcendentals = B * n_head * T * T
    bytes_accessed = int(2 * B * T * E * x.dtype.itemsize
                         + w_qkv.size * 2 + w_o.size * 2
                         + b_qkv.size * 4 + b_o.size * 4 + valid_nums.size * 4)
    cost = pl.CostEstimate(flops=flops, transcendentals=transcendentals,
                           bytes_accessed=bytes_accessed)

    # VMEM budget from the actual tile sizes, capped below the device capacity
    # (v7x has only 64 MiB per TensorCore; leave headroom for compiler scratch).
    try:
        vmem_cap = pltpu.get_tpu_info().vmem_capacity_bytes
    except Exception:  # hardware-info query only; never hides kernel errors
        vmem_cap = 64 * 1024 * 1024

    def vmem_need(weight_bufs):
        return (weight_bufs * (w_qkv.size * 2 + w_o.size * 2
                               + b_qkv.size * 4 + b_o.size * 4)
                + 2 * 2 * R * E * x.dtype.itemsize       # x + out blocks, double-buffered
                + R * 3 * E * 2 + R * E * 2              # qkv / ctx bf16 scratch
                + R * 3 * E * 4                          # f32 qkv intermediate
                + 3 * T * T * 4                          # scores / exp / probs in flight
                + R * E * 4)                             # f32 projection output

    def run(single_buffer_weights):
        weight_bufs = 1 if single_buffer_weights else 2
        vmem_limit = int(min(int(vmem_cap * 0.75),
                             max(16 * 1024 * 1024, 2 * vmem_need(weight_bufs))))
        kw = dict(pipeline_mode=pl.Buffered(1)) if single_buffer_weights else {}
        in_specs = [
            pl.BlockSpec((R, E), lambda i, vn: (i, 0)),                   # x rows
            pl.BlockSpec((E, 3 * E), lambda i, vn: (0, 0), **kw),         # w_qkv
            pl.BlockSpec((1, 3 * E), lambda i, vn: (0, 0), **kw),         # b_qkv
            pl.BlockSpec((E, E), lambda i, vn: (0, 0), **kw),             # w_o
            pl.BlockSpec((1, E), lambda i, vn: (0, 0), **kw),             # b_o
        ]
        out_spec = pl.BlockSpec((R, E), lambda i, vn: (i, 0))
        return pl.pallas_call(
            kernel,
            out_shape=jax.ShapeDtypeStruct((B * T, E), x.dtype),
            grid_spec=pltpu.PrefetchScalarGridSpec(
                num_scalar_prefetch=1,
                grid=(n_blocks,),
                in_specs=in_specs,
                out_specs=out_spec,
                scratch_shapes=[pltpu.VMEM((R, 3 * E), jnp.bfloat16),
                                pltpu.VMEM((R, E), jnp.bfloat16)],
            ),
            compiler_params=pltpu.CompilerParams(
                dimension_semantics=("parallel",),
                vmem_limit_bytes=vmem_limit),
            cost_estimate=cost,
        )(*args)

    if _SINGLE_BUFFER_WEIGHTS is None:
        try:
            out = run(single_buffer_weights=True)
            _SINGLE_BUFFER_WEIGHTS = True
        except _FALLBACK_ERRORS:
            _SINGLE_BUFFER_WEIGHTS = False
            out = run(single_buffer_weights=False)
    else:
        out = run(single_buffer_weights=_SINGLE_BUFFER_WEIGHTS)

    return out.reshape(B, T, E)


def _reference(x, params, valid_nums, n_head):
    """Pure-JAX f32 replica of the PyTorch forward (dropout = identity)."""
    B, T, E = x.shape
    D = E // n_head

    def lin(p, z):
        return z @ jnp.asarray(p["weight"]).T + jnp.asarray(p["bias"])

    q = lin(params["w_q"], x).reshape(B, T, n_head, D).transpose(0, 2, 1, 3)
    k = lin(params["w_k"], x).reshape(B, T, n_head, D).transpose(0, 2, 1, 3)
    v = lin(params["w_v"], x).reshape(B, T, n_head, D).transpose(0, 2, 1, 3)
    s = jnp.einsum("bhtd,bhsd->bhts", q, k) / math.sqrt(D)
    if valid_nums is not None:
        keep = jnp.arange(T)[None, None, None, :] < valid_nums[:, None, None, None]
        s = jnp.where(keep, s, -jnp.inf)
    p = jax.nn.softmax(s, axis=-1)
    o = jnp.einsum("bhts,bhsd->bhtd", p, v).transpose(0, 2, 1, 3).reshape(B, T, E)
    return lin(params["w_o"], o)


if __name__ == "__main__":
    B, T, E, H = 2, 8, 32, 4   # n_embd=32, n_head=4, head_dim=8

    key = jax.random.PRNGKey(0)
    ks = jax.random.split(key, 10)

    def linear_params(kw_, kb_):
        # PyTorch nn.Linear weight shape: (out_features, in_features)
        bound = 1.0 / math.sqrt(E)
        w = jax.random.uniform(kw_, (E, E), jnp.float32, -bound, bound)
        b = jax.random.uniform(kb_, (E,), jnp.float32, -bound, bound)
        return {"weight": w, "bias": b}

    params = {
        "w_q": linear_params(ks[0], ks[1]),
        "w_k": linear_params(ks[2], ks[3]),
        "w_v": linear_params(ks[4], ks[5]),
        "w_o": linear_params(ks[6], ks[7]),
    }

    x = jax.random.normal(ks[8], (B, T, E), jnp.float32)
    valid_nums = jnp.array([5, 8], dtype=jnp.int32)

    out = jax.block_until_ready(causal_self_attention(x, params, valid_nums, n_head=H))
    ref = _reference(x, params, valid_nums, H)
    assert out.shape == (B, T, E)
    # bf16 MXU operands with f32 accumulation -> tolerance loosened vs pure-f32 ref.
    assert jnp.allclose(out, ref, atol=5e-2, rtol=5e-2), "mismatch vs reference"

    # also exercise the valid_nums=None (unmasked) path
    out2 = jax.block_until_ready(causal_self_attention(x, params, None, n_head=H))
    ref2 = _reference(x, params, None, H)
    assert jnp.allclose(out2, ref2, atol=5e-2, rtol=5e-2), "mismatch vs reference (no mask)"

    print("KERNEL_OK")
</pallas_src>

<mosaic_0001>
module attributes {stable_mosaic.version = 11 : i64} {
  func.func @_attn_kernel(%arg0: i32, %arg1: memref<2xi32, #tpu.memory_space<smem>>, %arg2: memref<8x32xf32, #tpu.memory_space<vmem>>, %arg3: memref<32x96xbf16, #tpu.memory_space<vmem>>, %arg4: memref<1x96xf32, #tpu.memory_space<vmem>>, %arg5: memref<32x32xbf16, #tpu.memory_space<vmem>>, %arg6: memref<1x32xf32, #tpu.memory_space<vmem>>, %arg7: memref<8x32xf32, #tpu.memory_space<vmem>>, %arg8: memref<8x96xbf16, #tpu.memory_space<vmem>>, %arg9: memref<8x32xbf16, #tpu.memory_space<vmem>>) attributes {dimension_semantics = [#tpu.dimension_semantics<parallel>], iteration_bounds = array<i64: 2>, scalar_prefetch = 1 : i64, scratch_operands = 2 : i64, tpu.core_type = #tpu.core_type<tc>, window_params = [{transform_indices = @transform_0, window_bounds = array<i64: 8, 32>}, {pipeline_mode = #tpu.pipeline_mode<synchronous>, transform_indices = @transform_1, window_bounds = array<i64: 32, 96>}, {pipeline_mode = #tpu.pipeline_mode<synchronous>, transform_indices = @transform_2, window_bounds = array<i64: 1, 96>}, {pipeline_mode = #tpu.pipeline_mode<synchronous>, transform_indices = @transform_3, window_bounds = array<i64: 32, 32>}, {pipeline_mode = #tpu.pipeline_mode<synchronous>, transform_indices = @transform_4, window_bounds = array<i64: 1, 32>}, {transform_indices = @transform_5, window_bounds = array<i64: 8, 32>}]} {
    %c0 = arith.constant 0 : index
    %c0_0 = arith.constant 0 : index
    %0 = vector.load %arg2[%c0, %c0_0] : memref<8x32xf32, #tpu.memory_space<vmem>>, vector<8x32xf32>
    %1 = arith.truncf %0 : vector<8x32xf32> to vector<8x32xbf16>
    %c0_1 = arith.constant 0 : index
    %c0_2 = arith.constant 0 : index
    %2 = vector.load %arg3[%c0_1, %c0_2] : memref<32x96xbf16, #tpu.memory_space<vmem>>, vector<32x96xbf16>
    %cst = arith.constant dense<0.000000e+00> : vector<8x96xf32>
    %3 = tpu.matmul %1, %2, %cst {dimension_numbers = #tpu.dot_dimension_numbers<[1], [0], [0], [1], [0, 0, 1, 1], [], []>} : vector<8x32xbf16>, vector<32x96xbf16>, vector<8x96xf32> -> vector<8x96xf32>
    %c0_3 = arith.constant 0 : index
    %c0_4 = arith.constant 0 : index
    %4 = vector.load %arg4[%c0_3, %c0_4] : memref<1x96xf32, #tpu.memory_space<vmem>>, vector<1x96xf32>
    %5 = vector.broadcast %4 : vector<1x96xf32> to vector<8x96xf32>
    %6 = arith.addf %3, %5 : vector<8x96xf32>
    %7 = arith.truncf %6 : vector<8x96xf32> to vector<8x96xbf16>
    %c0_5 = arith.constant 0 : index
    %c0_6 = arith.constant 0 : index
    %8 = vector.load %arg8[%c0_5, %c0_6] : memref<8x96xbf16, #tpu.memory_space<vmem>>, vector<8x96xbf16>
    tpu.vector_store %arg8[%c0_5, %c0_6], %7 {strides = array<i32>} : memref<8x96xbf16, #tpu.memory_space<vmem>>, vector<8x96xbf16>,
    %c0_i32 = arith.constant 0 : i32
    %c8_i32 = arith.constant 8 : i32
    %9 = arith.muli %c0_i32, %c8_i32 : i32
    %10 = tpu.assume_multiple %9, 8 : i32
    %c1_i32 = arith.constant 1 : i32
    %11 = arith.muli %arg0, %c1_i32 : i32
    %12 = arith.addi %11, %c0_i32 : i32
    %13 = arith.index_cast %12 : i32 to index
    %14 = memref.load %arg1[%13] : memref<2xi32, #tpu.memory_space<smem>>
    %15 = tpu.iota {dimensions = array<i32: 1>} : vector<1x8xi32>
    %16 = vector.broadcast %14 : i32 to vector<1x8xi32>
    %17 = arith.cmpi slt, %15, %16 : vector<1x8xi32>
    %cst_7 = arith.constant 0.000000e+00 : f32
    %cst_8 = arith.constant -1.000000e+30 : f32
    %18 = vector.broadcast %cst_7 : f32 to vector<1x8xf32>
    %19 = vector.broadcast %cst_8 : f32 to vector<1x8xf32>
    %20 = arith.select %17, %18, %19 : vector<1x8xi1>, vector<1x8xf32>
    %21 = arith.index_cast %10 : i32 to index
    %c0_9 = arith.constant 0 : index
    %22 = vector.load %arg8[%21, %c0_9] : memref<8x96xbf16, #tpu.memory_space<vmem>>, vector<8x8xbf16>
    %23 = arith.index_cast %10 : i32 to index
    %c32 = arith.constant 32 : index
    %24 = vector.load %arg8[%23, %c32] : memref<8x96xbf16, #tpu.memory_space<vmem>>, vector<8x8xbf16>
    %25 = arith.index_cast %10 : i32 to index
    %c64 = arith.constant 64 : index
    %26 = vector.load %arg8[%25, %c64] : memref<8x96xbf16, #tpu.memory_space<vmem>>, vector<8x8xbf16>
    %cst_10 = arith.constant dense<0.000000e+00> : vector<8x8xf32>
    %27 = tpu.matmul %22, %24, %cst_10 {dimension_numbers = #tpu.dot_dimension_numbers<[1], [1], [0], [0], [0, 0, 1, 0], [], []>} : vector<8x8xbf16>, vector<8x8xbf16>, vector<8x8xf32> -> vector<8x8xf32>
    %28 = vector.broadcast %20 : vector<1x8xf32> to vector<8x8xf32>
    %29 = arith.addf %27, %28 : vector<8x8xf32>
    %cst_11 = arith.constant dense<0xFF800000> : vector<8xf32>
    %30 = vector.multi_reduction <maximumf>, %29, %cst_11 [1] : vector<8x8xf32> to vector<8xf32>
    %31 = vector.shape_cast %30 : vector<8xf32> to vector<8x1xf32>
    %32 = vector.broadcast %31 : vector<8x1xf32> to vector<8x8xf32>
    %33 = arith.subf %29, %32 : vector<8x8xf32>
    %34 = math.exp %33 : vector<8x8xf32>
    %cst_12 = arith.constant dense<0.000000e+00> : vector<8xf32>
    %35 = vector.multi_reduction <add>, %34, %cst_12 [1] : vector<8x8xf32> to vector<8xf32>
    %36 = vector.shape_cast %35 : vector<8xf32> to vector<8x1xf32>
    %37 = tpu.reciprocal %36 {approx = true} : vector<8x1xf32> -> vector<8x1xf32>
    %38 = vector.broadcast %37 : vector<8x1xf32> to vector<8x8xf32>
    %39 = arith.mulf %34, %38 : vector<8x8xf32>
    %40 = arith.truncf %39 : vector<8x8xf32> to vector<8x8xbf16>
    %cst_13 = arith.constant dense<0.000000e+00> : vector<8x8xf32>
    %41 = tpu.matmul %40, %26, %cst_13 {dimension_numbers = #tpu.dot_dimension_numbers<[1], [0], [0], [1], [0, 0, 1, 1], [], []>} : vector<8x8xbf16>, vector<8x8xbf16>, vector<8x8xf32> -> vector<8x8xf32>
    %42 = arith.truncf %41 : vector<8x8xf32> to vector<8x8xbf16>
    %43 = arith.index_cast %10 : i32 to index
    %c0_14 = arith.constant 0 : index
    %44 = vector.load %arg9[%43, %c0_14] : memref<8x32xbf16, #tpu.memory_space<vmem>>, vector<8x8xbf16>
    tpu.vector_store %arg9[%43, %c0_14], %42 {strides = array<i32>} : memref<8x32xbf16, #tpu.memory_space<vmem>>, vector<8x8xbf16>,
    %45 = arith.index_cast %10 : i32 to index
    %c8 = arith.constant 8 : index
    %46 = vector.load %arg8[%45, %c8] : memref<8x96xbf16, #tpu.memory_space<vmem>>, vector<8x8xbf16>
    %47 = arith.index_cast %10 : i32 to index
    %c40 = arith.constant 40 : index
    %48 = vector.load %arg8[%47, %c40] : memref<8x96xbf16, #tpu.memory_space<vmem>>, vector<8x8xbf16>
    %49 = arith.index_cast %10 : i32 to index
    %c72 = arith.constant 72 : index
    %50 = vector.load %arg8[%49, %c72] : memref<8x96xbf16, #tpu.memory_space<vmem>>, vector<8x8xbf16>
    %cst_15 = arith.constant dense<0.000000e+00> : vector<8x8xf32>
    %51 = tpu.matmul %46, %48, %cst_15 {dimension_numbers = #tpu.dot_dimension_numbers<[1], [1], [0], [0], [0, 0, 1, 0], [], []>} : vector<8x8xbf16>, vector<8x8xbf16>, vector<8x8xf32> -> vector<8x8xf32>
    %52 = vector.broadcast %20 : vector<1x8xf32> to vector<8x8xf32>
    %53 = arith.addf %51, %52 : vector<8x8xf32>
    %cst_16 = arith.constant dense<0xFF800000> : vector<8xf32>
    %54 = vector.multi_reduction <maximumf>, %53, %cst_16 [1] : vector<8x8xf32> to vector<8xf32>
    %55 = vector.shape_cast %54 : vector<8xf32> to vector<8x1xf32>
    %56 = vector.broadcast %55 : vector<8x1xf32> to vector<8x8xf32>
    %57 = arith.subf %53, %56 : vector<8x8xf32>
    %58 = math.exp %57 : vector<8x8xf32>
    %cst_17 = arith.constant dense<0.000000e+00> : vector<8xf32>
    %59 = vector.multi_reduction <add>, %58, %cst_17 [1] : vector<8x8xf32> to vector<8xf32>
    %60 = vector.shape_cast %59 : vector<8xf32> to vector<8x1xf32>
    %61 = tpu.reciprocal %60 {approx = true} : vector<8x1xf32> -> vector<8x1xf32>
    %62 = vector.broadcast %61 : vector<8x1xf32> to vector<8x8xf32>
    %63 = arith.mulf %58, %62 : vector<8x8xf32>
    %64 = arith.truncf %63 : vector<8x8xf32> to vector<8x8xbf16>
    %cst_18 = arith.constant dense<0.000000e+00> : vector<8x8xf32>
    %65 = tpu.matmul %64, %50, %cst_18 {dimension_numbers = #tpu.dot_dimension_numbers<[1], [0], [0], [1], [0, 0, 1, 1], [], []>} : vector<8x8xbf16>, vector<8x8xbf16>, vector<8x8xf32> -> vector<8x8xf32>
    %66 = arith.truncf %65 : vector<8x8xf32> to vector<8x8xbf16>
    %67 = arith.index_cast %10 : i32 to index
    %c8_19 = arith.constant 8 : index
    %68 = vector.load %arg9[%67, %c8_19] : memref<8x32xbf16, #tpu.memory_space<vmem>>, vector<8x8xbf16>
    tpu.vector_store %arg9[%67, %c8_19], %66 {strides = array<i32>} : memref<8x32xbf16, #tpu.memory_space<vmem>>, vector<8x8xbf16>,
    %69 = arith.index_cast %10 : i32 to index
    %c16 = arith.constant 16 : index
    %70 = vector.load %arg8[%69, %c16] : memref<8x96xbf16, #tpu.memory_space<vmem>>, vector<8x8xbf16>
    %71 = arith.index_cast %10 : i32 to index
    %c48 = arith.constant 48 : index
    %72 = vector.load %arg8[%71, %c48] : memref<8x96xbf16, #tpu.memory_space<vmem>>, vector<8x8xbf16>
    %73 = arith.index_cast %10 : i32 to index
    %c80 = arith.constant 80 : index
    %74 = vector.load %arg8[%73, %c80] : memref<8x96xbf16, #tpu.memory_space<vmem>>, vector<8x8xbf16>
    %cst_20 = arith.constant dense<0.000000e+00> : vector<8x8xf32>
    %75 = tpu.matmul %70, %72, %cst_20 {dimension_numbers = #tpu.dot_dimension_numbers<[1], [1], [0], [0], [0, 0, 1, 0], [], []>} : vector<8x8xbf16>, vector<8x8xbf16>, vector<8x8xf32> -> vector<8x8xf32>
    %76 = vector.broadcast %20 : vector<1x8xf32> to vector<8x8xf32>
    %77 = arith.addf %75, %76 : vector<8x8xf32>
    %cst_21 = arith.constant dense<0xFF800000> : vector<8xf32>
    %78 = vector.multi_reduction <maximumf>, %77, %cst_21 [1] : vector<8x8xf32> to vector<8xf32>
    %79 = vector.shape_cast %78 : vector<8xf32> to vector<8x1xf32>
    %80 = vector.broadcast %79 : vector<8x1xf32> to vector<8x8xf32>
    %81 = arith.subf %77, %80 : vector<8x8xf32>
    %82 = math.exp %81 : vector<8x8xf32>
    %cst_22 = arith.constant dense<0.000000e+00> : vector<8xf32>
    %83 = vector.multi_reduction <add>, %82, %cst_22 [1] : vector<8x8xf32> to vector<8xf32>
    %84 = vector.shape_cast %83 : vector<8xf32> to vector<8x1xf32>
    %85 = tpu.reciprocal %84 {approx = true} : vector<8x1xf32> -> vector<8x1xf32>
    %86 = vector.broadcast %85 : vector<8x1xf32> to vector<8x8xf32>
    %87 = arith.mulf %82, %86 : vector<8x8xf32>
    %88 = arith.truncf %87 : vector<8x8xf32> to vector<8x8xbf16>
    %cst_23 = arith.constant dense<0.000000e+00> : vector<8x8xf32>
    %89 = tpu.matmul %88, %74, %cst_23 {dimension_numbers = #tpu.dot_dimension_numbers<[1], [0], [0], [1], [0, 0, 1, 1], [], []>} : vector<8x8xbf16>, vector<8x8xbf16>, vector<8x8xf32> -> vector<8x8xf32>
    %90 = arith.truncf %89 : vector<8x8xf32> to vector<8x8xbf16>
    %91 = arith.index_cast %10 : i32 to index
    %c16_24 = arith.constant 16 : index
    %92 = vector.load %arg9[%91, %c16_24] : memref<8x32xbf16, #tpu.memory_space<vmem>>, vector<8x8xbf16>
    tpu.vector_store %arg9[%91, %c16_24], %90 {strides = array<i32>} : memref<8x32xbf16, #tpu.memory_space<vmem>>, vector<8x8xbf16>,
    %93 = arith.index_cast %10 : i32 to index
    %c24 = arith.constant 24 : index
    %94 = vector.load %arg8[%93, %c24] : memref<8x96xbf16, #tpu.memory_space<vmem>>, vector<8x8xbf16>
    %95 = arith.index_cast %10 : i32 to index
    %c56 = arith.constant 56 : index
    %96 = vector.load %arg8[%95, %c56] : memref<8x96xbf16, #tpu.memory_space<vmem>>, vector<8x8xbf16>
    %97 = arith.index_cast %10 : i32 to index
    %c88 = arith.constant 88 : index
    %98 = vector.load %arg8[%97, %c88] : memref<8x96xbf16, #tpu.memory_space<vmem>>, vector<8x8xbf16>
    %cst_25 = arith.constant dense<0.000000e+00> : vector<8x8xf32>
    %99 = tpu.matmul %94, %96, %cst_25 {dimension_numbers = #tpu.dot_dimension_numbers<[1], [1], [0], [0], [0, 0, 1, 0], [], []>} : vector<8x8xbf16>, vector<8x8xbf16>, vector<8x8xf32> -> vector<8x8xf32>
    %100 = vector.broadcast %20 : vector<1x8xf32> to vector<8x8xf32>
    %101 = arith.addf %99, %100 : vector<8x8xf32>
    %cst_26 = arith.constant dense<0xFF800000> : vector<8xf32>
    %102 = vector.multi_reduction <maximumf>, %101, %cst_26 [1] : vector<8x8xf32> to vector<8xf32>
    %103 = vector.shape_cast %102 : vector<8xf32> to vector<8x1xf32>
    %104 = vector.broadcast %103 : vector<8x1xf32> to vector<8x8xf32>
    %105 = arith.subf %101, %104 : vector<8x8xf32>
    %106 = math.exp %105 : vector<8x8xf32>
    %cst_27 = arith.constant dense<0.000000e+00> : vector<8xf32>
    %107 = vector.multi_reduction <add>, %106, %cst_27 [1] : vector<8x8xf32> to vector<8xf32>
    %108 = vector.shape_cast %107 : vector<8xf32> to vector<8x1xf32>
    %109 = tpu.reciprocal %108 {approx = true} : vector<8x1xf32> -> vector<8x1xf32>
    %110 = vector.broadcast %109 : vector<8x1xf32> to vector<8x8xf32>
    %111 = arith.mulf %106, %110 : vector<8x8xf32>
    %112 = arith.truncf %111 : vector<8x8xf32> to vector<8x8xbf16>
    %cst_28 = arith.constant dense<0.000000e+00> : vector<8x8xf32>
    %113 = tpu.matmul %112, %98, %cst_28 {dimension_numbers = #tpu.dot_dimension_numbers<[1], [0], [0], [1], [0, 0, 1, 1], [], []>} : vector<8x8xbf16>, vector<8x8xbf16>, vector<8x8xf32> -> vector<8x8xf32>
    %114 = arith.truncf %113 : vector<8x8xf32> to vector<8x8xbf16>
    %115 = arith.index_cast %10 : i32 to index
    %c24_29 = arith.constant 24 : index
    %116 = vector.load %arg9[%115, %c24_29] : memref<8x32xbf16, #tpu.memory_space<vmem>>, vector<8x8xbf16>
    tpu.vector_store %arg9[%115, %c24_29], %114 {strides = array<i32>} : memref<8x32xbf16, #tpu.memory_space<vmem>>, vector<8x8xbf16>,
    %c1_i32_30 = arith.constant 1 : i32
    %c0_31 = arith.constant 0 : index
    %c0_32 = arith.constant 0 : index
    %117 = vector.load %arg9[%c0_31, %c0_32] : memref<8x32xbf16, #tpu.memory_space<vmem>>, vector<8x32xbf16>
    %c0_33 = arith.constant 0 : index
    %c0_34 = arith.constant 0 : index
    %118 = vector.load %arg5[%c0_33, %c0_34] : memref<32x32xbf16, #tpu.memory_space<vmem>>, vector<32x32xbf16>
    %cst_35 = arith.constant dense<0.000000e+00> : vector<8x32xf32>
    %119 = tpu.matmul %117, %118, %cst_35 {dimension_numbers = #tpu.dot_dimension_numbers<[1], [0], [0], [1], [0, 0, 1, 1], [], []>} : vector<8x32xbf16>, vector<32x32xbf16>, vector<8x32xf32> -> vector<8x32xf32>
    %c0_36 = arith.constant 0 : index
    %c0_37 = arith.constant 0 : index
    %120 = vector.load %arg6[%c0_36, %c0_37] : memref<1x32xf32, #tpu.memory_space<vmem>>, vector<1x32xf32>
    %121 = vector.broadcast %120 : vector<1x32xf32> to vector<8x32xf32>
    %122 = arith.addf %119, %121 : vector<8x32xf32>
    %c0_38 = arith.constant 0 : index
    %c0_39 = arith.constant 0 : index
    %123 = vector.load %arg7[%c0_38, %c0_39] : memref<8x32xf32, #tpu.memory_space<vmem>>, vector<8x32xf32>
    tpu.vector_store %arg7[%c0_38, %c0_39], %122 {strides = array<i32>} : memref<8x32xf32, #tpu.memory_space<vmem>>, vector<8x32xf32>,
    return
  }
  func.func @transform_0(%arg0: i32, %arg1: memref<2xi32, #tpu.memory_space<smem>>) -> (i32, i32) {
    %c0_i32 = arith.constant 0 : i32
    %c0_i32_0 = arith.constant 0 : i32
    return %arg0, %c0_i32 : i32, i32
  }
  func.func @transform_1(%arg0: i32, %arg1: memref<2xi32, #tpu.memory_space<smem>>) -> (i32, i32) {
    %c0_i32 = arith.constant 0 : i32
    %c0_i32_0 = arith.constant 0 : i32
    %c0_i32_1 = arith.constant 0 : i32
    return %c0_i32, %c0_i32_0 : i32, i32
  }
  func.func @transform_2(%arg0: i32, %arg1: memref<2xi32, #tpu.memory_space<smem>>) -> (i32, i32) {
    %c0_i32 = arith.constant 0 : i32
    %c0_i32_0 = arith.constant 0 : i32
    %c0_i32_1 = arith.constant 0 : i32
    return %c0_i32, %c0_i32_0 : i32, i32
  }
  func.func @transform_3(%arg0: i32, %arg1: memref<2xi32, #tpu.memory_space<smem>>) -> (i32, i32) {
    %c0_i32 = arith.constant 0 : i32
    %c0_i32_0 = arith.constant 0 : i32
    %c0_i32_1 = arith.constant 0 : i32
    return %c0_i32, %c0_i32_0 : i32, i32
  }
  func.func @transform_4(%arg0: i32, %arg1: memref<2xi32, #tpu.memory_space<smem>>) -> (i32, i32) {
    %c0_i32 = arith.constant 0 : i32
    %c0_i32_0 = arith.constant 0 : i32
    %c0_i32_1 = arith.constant 0 : i32
    return %c0_i32, %c0_i32_0 : i32, i32
  }
  func.func @transform_5(%arg0: i32, %arg1: memref<2xi32, #tpu.memory_space<smem>>) -> (i32, i32) {
    %c0_i32 = arith.constant 0 : i32
    %c0_i32_0 = arith.constant 0 : i32
    return %arg0, %c0_i32 : i32, i32
  }
}

</mosaic_0001>

<bundles_post_ra>
// kernel: tpu_custom_call.1
= control target key start
LH: loop header
LB: loop body
LE: loop exit
PB: predicated region body
PF: predicated region fallthrough
CT: control target
= control target key end

     0   :  { %s1409_s21 = smov [#allocation5]   ;;  %s1737_s0 = inlined_call_operand.hbm [shape: s32[2], index: 0, kind: input, shape index: {}]   ;;  %s1738_s1 = inlined_call_operand.hbm [shape: f32[16,32], index: 1, kind: input, shape index: {}]   ;;  %s1739_s2 = inlined_call_operand.hbm [shape: bf16[32,96], index: 2, kind: input, shape index: {}]   ;;  %s1740_s3 = inlined_call_operand.vmem [shape: f32[1,96], index: 3, kind: input, shape index: {}]   ;;  %s1741_s4 = inlined_call_operand.hbm [shape: bf16[32,32], index: 4, kind: input, shape index: {}]   ;;  %s1742_s5 = inlined_call_operand.vmem [shape: f32[1,32], index: 5, kind: input, shape index: {}]   ;;  %s1743_s6 = inlined_call_operand.hbm [shape: f32[16,32], index: 6, kind: output, shape index: {}]  }
   0x1   :  { %12 = dma.hbm_to_smem %s1737_s0, 16, %s1409_s21, [#allocation4] }
   0x2   :  { %1379 = dma.done.wait [#allocation4], 16 }
   0x3   :  { %1380 = vsyncadd [#allocation4], 4294967280 }
   0x4   :  { %14 = sfence }
   0x5   :  { %15 = vsyncpa [#allocation7], 0 }
   0x6   :  { %17 = vsyncpa [#allocation7 + $0x1], 0 }
   0x7   :  { %18 = vsyncpa [#allocation10], 0 }
   0x8   :  { %19 = vsyncpa [#allocation8], 0 }
   0x9   :  { %21 = vsyncpa [#allocation8 + $0x1], 0  ;;  %s1471_s24 = smov 0   ;;  %s1473_s25 = smov 0  }
   0xa   :  { %s1475_s26 = smov 0   ;;  %s1477_s27 = smov 0  }
   0xb LB: > { %s1492_s0 = sadd.s32 4294967295, %s1407_s27   ;;  %s1010_s28 = sadd.s32 4294967294, %s1407_s27   ;;  %s1407_s27 = sphi %s1477_s27, %s1765_s27   ;;  %s1403_s26 = sphi %s1475_s26, %s1764_s26   ;;  %s1399_s25 = sphi %s1473_s25, %s1763_s25   ;;  %s1395_s24 = sphi %s1471_s24, %s1762_s24  }
   0xc   : > { %p47_p0 = scmp.ne.s32.totalorder %s1399_s25, %s1395_s24  ;;  %p1744_p1 = scmp.eq.s32.totalorder %s1492_s0, 0 }
   0xd   : > { %p161_p3 = scmp.eq.s32.totalorder %s1010_s28, 1  ;;  %p1011_p5 = scmp.ge.s32.totalorder %s1407_s27, 1 }
   0xe   : > { %p1501_p4 = por %p1744_p1, %p47_p0  ;;  %p168_p7 = scmp.lt.s32.totalorder %s1407_s27, 3 }
   0xf   : > { %p1506_p6 = por %p161_p3, %p47_p0  ;;  %s1410_s8 = smov [#allocation9]  }
  0x10   : > { %s1748_s29 = scalar_select %p1501_p4, 1, 0 }
  0x11   : > { %s1749_s30 = scalar_select %p1506_p6, 1, 0 }
  0x12   : > { %p1511_p8 = pnand %p1011_p5, %p168_p7  ;;  %s180_s9 = sshll.u32 %s1410_s8, 4  ;;  %s181_s9 = int_to_ptr.vmem [resolvable:$true] %s180_s9 }
  0x13   : > { %s1411_s11 = smov [#allocation11]   ;;  %s1268_s13 = scalar_lea.vmem %s181_s9, 256 }
  0x14   : > { %s1750_s7 = scalar_select %p1511_p8, 1, 0 }
  0x15   : > { %p1150_p9 = pneg %p1511_p8  ;;  %s196_s12 = sshll.u32 %s1411_s11, 4  ;;  %s197_s12 = int_to_ptr.vmem [resolvable:$true] %s196_s12 }
  0x16   : > { %p1269_p13 = scmp.ne.s32.totalorder %s181_s9, %s1268_s13  ;;  %p1276_p5 = scmp.lt.s32.totalorder %s181_s9, %s181_s9 }
  0x17   : > { %p1520_p11 = pnand %p1150_p9, %p1744_p1  ;;  %p1277_p7 = scmp.lt.s32.totalorder %s1268_s13, %s1268_s13 }
  0x19   : > { %p1259_p12 = pneg %p1520_p11  ;;  %p1278_p10 = por %p1277_p7, %p1276_p5 }
  0x1b   : > { %p1271_p0 = pnand %p1269_p13, %p1259_p12 }
  0x1d   : > { %p1272_p3 = pneg %p1271_p0 }
  0x1f   : > { %p1279_p9 = pnand %p1278_p10, %p1272_p3 }
  0x21   : > { %1282 = shalt.err (!%p1279_p9)
}
  0x22   : > { %s1412_s14 = smov 64   ;;  %s1413_s15 = smov 4  }
  0x23   : > { %1153 = dma.hbm_to_vmem [thread:$0]  (!%p1520_p11), %s1739_s2, 256, %s181_s9, [#allocation10], %s1412_s14, %s1412_s14, %s1413_s15  }
  0x24   : > { %s1294_s18 = scalar_lea.vmem %s197_s12, 256  ;;  %p1302_p2 = scmp.lt.s32.totalorder %s197_s12, %s197_s12 }
  0x25   : > { %p1295_p1 = scmp.ne.s32.totalorder %s197_s12, %s1294_s18  ;;  %p1303_p6 = scmp.lt.s32.totalorder %s1294_s18, %s1294_s18 }
  0x27   : > { %p1297_p13 = pnand %p1295_p1, %p1259_p12  ;;  %p1304_p5 = por %p1303_p6, %p1302_p2 }
  0x29   : > { %p1298_p0 = pneg %p1297_p13 }
  0x2b   : > { %p1305_p10 = pnand %p1304_p5, %p1298_p0 }
  0x2d   : > { %1308 = shalt.err (!%p1305_p10)
}
  0x2e   : > { %1156 = dma.hbm_to_vmem [thread:$0]  (!%p1520_p11), %s1741_s4, 256, %s197_s12, [#allocation10], %s1412_s14, %s1412_s14, %s1413_s15  }
  0x2f   : > { %s1543_s21 = sadd.s32 1, %s1407_s27   ;;  %s34_s22 = sadd.s32 1, %s1403_s26 }
  0x30   : > { %s31_s23 = ssub.s32 %s1407_s27, %s1543_s21  ;;  %p41_p1 = scmp.ne.s32.totalorder %s1403_s26, %s1399_s25 }
  0x31   : > { %p32_p2 = scmp.eq.s32.totalorder %s31_s23, 0  ;;  %p42_p6 = scmp.eq.s32.totalorder %s1407_s27, 0 }
  0x32   : > { %p1752_p12 = scmp.eq.s32.totalorder %s1492_s0, 1  ;;  %p1167_p7 = scmp.lt.s32.totalorder %s1407_s27, 2 }
  0x33   : > { %s1559_s8 = scalar_select %p32_p2, %s1403_s26, %s34_s22  }
  0x34   : > { %p1553_p3 = por %p1752_p12, %p41_p1  ;;  %p43_p9 = por %p42_p6, %p41_p1 }
  0x35   : > { %s213_s9 = sand.u32 1, %s1403_s26   ;;  %s1016_s11 = sshll.u32 %s1407_s27, 7 }
  0x36   : > { %s1753_s28 = scalar_select %p1553_p3, 1, 0 }
  0x37   : > { %s1015_s10 = sshll.u32 %s213_s9, 3  ;;  %s1566_s14 = scalar_lea.hbm %s1738_s1, %s1016_s11 }
  0x38   : > { %s217_s15 = scalar_lea.vmem [#allocation6], %s1015_s10  ;;  %p1568_p11 = pnand %p1167_p7, %p43_p9 }
  0x39   : > { %s224_s16 = sshll.u32 %s217_s15, 4  ;;  %s214_s18 = scalar_lea.sflag [#allocation7], %s213_s9  ;;  %s225_s16 = int_to_ptr.vmem [resolvable:$true] %s224_s16 }
  0x3a   : > { %s1309_s19 = scalar_lea.hbm %s1566_s14, 128  ;;  %p1311_p0 = pneg %p1568_p11 }
  0x3b   : > { %p1310_p13 = scmp.ne.s32.totalorder %s1566_s14, %s1309_s19  ;;  %s1314_s23 = scalar_lea.hbm %s1738_s1, 256 }
  0x3c   : > { %p1315_p1 = scmp.lt.s32.totalorder %s1566_s14, %s1738_s1  ;;  %p1316_p2 = scmp.lt.s32.totalorder %s1314_s23, %s1309_s19 }
  0x3d   : > { %p1312_p5 = pnand %p1311_p0, %p1310_p13 }
  0x3e   : > { %p1317_p6 = por %p1316_p2, %p1315_p1 }
  0x3f   : > { %p1313_p10 = pneg %p1312_p5 }
  0x41   : > { %p1318_p12 = pnand %p1317_p6, %p1313_p10 }
  0x43   : > { %1321 = shalt.err (!%p1318_p12)
}
  0x44   : > { %s1322_s12 = scalar_lea.vmem %s225_s16, 128  ;;  %s1414_s9 = smov [#allocation6]  }
  0x45   : > { %p1323_p7 = scmp.ne.s32.totalorder %s225_s16, %s1322_s12  ;;  %s1327_s13 = sshll.u32 %s1414_s9, 4  ;;  %s1328_s13 = int_to_ptr.vmem [resolvable:$false] %s1327_s13 }
  0x46   : > { %s1329_s15 = scalar_lea.vmem %s1328_s13, 256  ;;  %p1330_p13 = scmp.lt.s32.totalorder %s225_s16, %s1328_s13 }
  0x47   : > { %p1325_p9 = pnand %p1323_p7, %p1311_p0  ;;  %p1331_p5 = scmp.lt.s32.totalorder %s1329_s15, %s1322_s12 }
  0x49   : > { %p1326_p3 = pneg %p1325_p9  ;;  %p1332_p4 = por %p1331_p5, %p1330_p13 }
  0x4b   : > { %p1333_p8 = pnand %p1332_p4, %p1326_p3 }
  0x4d   : > { %1336 = shalt.err (!%p1333_p8)
}
  0x4e   : > { %1160 = dma.hbm_to_vmem [thread:$0]  (!%p1568_p11), %s1566_s14, 128, %s225_s16, %s214_s18  }
  0x4f   : > { %p1755_p10 = scmp.ne.s32.totalorder %s1750_s7, 0 }
  0x50   : > { %s1589_s19 = sand.u32 (!%p1755_p10), 1, %s1399_s25   ;;  %p1756_p4 = scmp.ne.s32.totalorder (!%p1755_p10), %s1748_s29, 0 }
  0x51   : > { %233 = sbr.rel (%p1755_p10) target bundleno = 1528 (0x5f8), region = 40  ;;  %s1018_s20 = sshll.u32 (!%p1755_p10), %s1589_s19, 3 }
  0x52   : > { %s236_s22 = scalar_lea.sflag (!%p1755_p10), [#allocation7], %s1589_s19  ;;  %s239_s23 = scalar_lea.vmem (!%p1755_p10), [#allocation6], %s1018_s20 }
  0x56   : > { %1382 = dma.done.wait (%p1756_p4), %s236_s22, 128  }
  0x57   : > { %1384 = vsyncadd (%p1756_p4), %s236_s22, 4294967168  ;;  %p1757_p8 = scmp.eq.s32.totalorder %s1492_s0, 0 }
  0x59   : > { %1386 = dma.done.wait (%p1757_p8), [#allocation10], 512   ;;  %p1758_p3 = pmov %p1757_p8 }
  0x5a   : > { %v1415_v0 = vmov 0.0   ;;  %vm1416_vm0 = vmmov 0   ;;  %v1225_v1 = vld [vmem:[#allocation9 + $0x8] sm:$0xff]   ;;  %v1226_v2 = vld [vmem:[#allocation9] sm:$0xff]   ;;  %v275_v3 = vld [vmem:[%s239_s23] sm:$0xff]  ;;  %vm300_vm1 = vcmask 261120   ;;  %v348_v28 = vlaneseq }
  0x5b   : > { %1388 = vsyncadd (%p1758_p3), [#allocation10], 4294966784  ;;  %1074 = vmatprep.subr.bf16.mxu0 %v1415_v0  ;;  %1078 = vmatprep.mubr.msk.bf16.mxu0 %vm1416_vm0, %v1415_v0  ;;  %v276_v4 = vpack.c.bf16 %v275_v3, %v275_v3  ;;  %v1022_v5 = vld [vmem:[%s1740_s3] ss:$0 sm:$0xff]  ;;  %vm345_vm2 = vcmask 781312   ;;  %s1417_s14 = smov 120  }
  0x5c   : > { %1082 = vmatprep.subr.bf16.mxu1 %v1415_v0  ;;  %1084 = vmatprep.mubr.msk.bf16.mxu1 %vm1416_vm0, %v1415_v0  ;;  %s1418_s16 = smov 96   ;;  %s1419_s17 = smov 80   ;;  %vm359_vm3 = vcmask 64512   ;;  %v349_v29 = vand.u32 127, %v348_v28  ;;  %v1424_v31 = vmov -1e+30  }
  0x5d   : > { %1075 = vmatpush3.bf16.msra.mxu0 %v1225_v1  ;;  %s1420_s18 = smov 88   ;;  %s1421_s11 = smov 72   ;;  %vm423_vm5 = vcmask 1043456   ;;  %vm468_vm6 = vcmask 60416   ;;  %vm591_vm7 = vcmask 126016   ;;  %vm714_vm8 = vcmask 191616  }
  0x5e   : > { %1076 = vmatprep.subr.bf16.mxu0 %v1415_v0  ;;  %s1422_s10 = smov 112   ;;  %s1423_s12 = smov 104   ;;  %vm837_vm9 = vcmask 257216  }
  0x5f   : > { %s347_s9 = sld [smem:[#allocation5 + %s1492_s0]]  ;;  %s1425_s13 = smov 56  }
  0x60   : > { %s1426_s15 = smov 64   ;;  %s1427_s22 = smov 40  }
  0x61   : > { %1077 = vmatpush3.bf16.msra.mxu0 %v1226_v2  ;;  %s1428_s23 = smov 48   ;;  %s1429_s29 = smov 8  }
  0x62   : > { %1088 = vmatprep.subr.bf16.mxu0 %v1415_v0  ;;  %s1430_s7 = smov 16   ;;  %p1759_p0 = scmp.ne.s32.totalorder %s1753_s28, 0 }
  0x64   : > { %1079 = vmatmul.mubr.msk.bf16.vlgmr.msra.gmra.mxu0 %vm300_vm1, %v276_v4 }
  0x65   : > { %1090 = vmatprep.mubr.msk.bf16.mxu0 %vm1416_vm0, %v1415_v0  ;;  %v350_v30 = vstv %s347_s9 }
  0x66   : > { %vm351_vm4 = vcmp.lt.s32.totalorder %v349_v29, %v350_v30 }
  0x67   : > { %v352_v32 = vsel %vm351_vm4, 0.0, %v1424_v31 }
 0x124   : > { %v338_v6 = vpop.f32.mrf.mxu0 }
 0x125   : > { %v339_v7 = vadd.f32 %v1022_v5, %v338_v6 }
 0x126   : > { %v1080_v8 = vpop.f32.mrf.mxu0 }
 0x127   : > { %v344_v9 = vpack.c.bf16 %v339_v7, %v339_v7 }
 0x128   : > { %v341_v10 = vpop.f32.mrf.mxu0 }
 0x129   : > { %346 = vst.msk [vmem:[#allocation2] sm:$0xf] %vm345_vm2, %v344_v9 }
 0x12a   : > { %v1081_v11 = vpop.f32.mrf.mxu0 }
 0x130   : > { %v1617_v12 = vld [vmem:[#allocation2] ss:$0 sps:$4 sm:$0xff]  }
 0x131   : > { %v353_v13 = vld [vmem:[#allocation2] sm:$0xf]  ;;  %474 = vrot.lane.b32.xlu1 %v1617_v12, %s1417_s14  ;;  %s1431_s14 = smov 24  }
 0x132   : > { %v1619_v14 = vcombine.low %v353_v13, %v353_v13  ;;  %v1623_v15 = vld [vmem:[#allocation2] ss:$0 sps:$4 sm:$0xff]  }
 0x133   : > { %v1627_v16 = vld [vmem:[#allocation2] ss:$0 sps:$4 sm:$0xff]  }
 0x134   : > { %357 = vrot.lane.b32.xlu0 %v1619_v14, %s1418_s16 }
 0x135   : > { %599 = vrot.lane.b32.xlu1 %v1623_v15, %s1419_s17 }
 0x138   : > { %476 = vrot.lane.b32.xlu0 %v1617_v12, %s1420_s18  ;;  %s1046_s18 = sshll.u32 %s1492_s0, 7  ;;  %s908_s0 = scalar_lea.sflag [#allocation8], %s1589_s19 }
 0x139   : > { %722 = vrot.lane.b32.xlu1 %v1627_v16, %s1421_s11  ;;  %s273_s11 = scalar_lea.vmem [#allocation12], %s1018_s20  ;;  %s1432_s20 = smov [#allocation12]  }
 0x13c   : > { %597 = vrot.lane.b32.xlu0 %v1623_v15, %s1422_s10  ;;  %s921_s10 = sshll.u32 %s273_s11, 4  ;;  %s1695_s10 = int_to_ptr.vmem [resolvable:$true] %s921_s10 }
 0x140   : > { %720 = vrot.lane.b32.xlu0 %v1627_v16, %s1423_s12 }
 0x1a3   : > { %v475_v20 = vpop.permute.xlu1 %474 }
 0x1a6   : > { %v358_v17 = vpop.permute.xlu0 %357 }
 0x1a7   : > { %v364_v18 = vsel %vm359_vm3, %v358_v17, 0  ;;  %v600_v22 = vpop.permute.xlu1 %599 }
 0x1a8   : > { %1083 = vmatpush3.bf16.xpose.msra.mxu1 %v364_v18  ;;  %v605_v23 = vsel %vm359_vm3, %v600_v22, 0 }
 0x1a9   : > { %1094 = vmatprep.subr.bf16.mxu1 %v1415_v0 }
 0x1aa   : > { %v477_v19 = vpop.permute.xlu0 %476 }
 0x1ab   : > { %v482_v21 = vsel %vm359_vm3, %v477_v19, 0  ;;  %v723_v24 = vpop.permute.xlu1 %722 }
 0x1ac   : > { %v728_v26 = vsel %vm359_vm3, %v723_v24, 0 }
 0x1ae   : > { %v598_v25 = vpop.permute.xlu0 %597 }
 0x1af   : > { %1085 = vmatmul.mubr.msk.bf16.vlgmr.msra.gmra.mxu1 %vm359_vm3, %v353_v13 }
 0x1b0   : > { %1095 = vmatpush3.bf16.xpose.msra.mxu1 %v482_v21  ;;  %1096 = vmatprep.mubr.msk.bf16.mxu1 %vm1416_vm0, %v1415_v0 }
 0x1b1   : > { %1106 = vmatprep.subr.bf16.mxu1 %v1415_v0 }
 0x1b2   : > { %v721_v27 = vpop.permute.xlu0 %720 }
 0x1b7   : > { %1097 = vmatmul.mubr.msk.bf16.vlgmr.msra.gmra.mxu1 %vm359_vm3, %v475_v20 }
 0x1b8   : > { %1107 = vmatpush3.bf16.xpose.msra.mxu1 %v605_v23  ;;  %1108 = vmatprep.mubr.msk.bf16.mxu1 %vm1416_vm0, %v1415_v0 }
 0x1b9   : > { %1118 = vmatprep.subr.bf16.mxu1 %v1415_v0 }
 0x1bf   : > { %1109 = vmatmul.mubr.msk.bf16.vlgmr.msra.gmra.mxu1 %vm359_vm3, %v598_v25 }
 0x1c0   : > { %1119 = vmatpush3.bf16.xpose.msra.mxu1 %v728_v26  ;;  %1120 = vmatprep.mubr.msk.bf16.mxu1 %vm1416_vm0, %v1415_v0 }
 0x1c1   : > { %1130 = vmatprep.subr.bf16.mxu1 %v1415_v0 }
 0x1c7   : > { %1121 = vmatmul.mubr.msk.bf16.vlgmr.msra.gmra.mxu1 %vm359_vm3, %v721_v27 }
 0x1c8   : > { %1134 = vmatprep.mubr.msk.bf16.mxu1 %vm1416_vm0, %v1415_v0 }
 0x26f   : > { %v400_v33 = vpop.f32.mrf.mxu1 }
 0x270   : > { %v401_v34 = vadd.f32 %v400_v33, %v352_v32 }
 0x271   : > { %v1086_v35 = vpop.f32.mrf.mxu1 }
 0x272   : > { %v406_v36 = vsel %vm359_vm3, %v401_v34, -inf }
 0x273   : > { %407 = vmax.xlane.f32.xlu1 %v406_v36  ;;  %v403_v37 = vpop.f32.mrf.mxu1 }
 0x275   : > { %v1087_v38 = vpop.f32.mrf.mxu1 }
 0x277   : > { %v518_v39 = vpop.f32.mrf.mxu1 }
 0x278   : > { %v519_v40 = vadd.f32 %v518_v39, %v352_v32 }
 0x279   : > { %v1098_v41 = vpop.f32.mrf.mxu1 }
 0x27a   : > { %v524_v42 = vsel %vm359_vm3, %v519_v40, -inf }
 0x27b   : > { %525 = vmax.xlane.f32.xlu0 %v524_v42  ;;  %v521_v43 = vpop.f32.mrf.mxu1 }
 0x27d   : > { %v1099_v44 = vpop.f32.mrf.mxu1 }
 0x27f   : > { %v641_v45 = vpop.f32.mrf.mxu1 }
 0x280   : > { %v642_v46 = vadd.f32 %v641_v45, %v352_v32 }
 0x281   : > { %v1110_v47 = vpop.f32.mrf.mxu1 }
 0x282   : > { %v647_v48 = vsel %vm359_vm3, %v642_v46, -inf }
 0x283   : > { %648 = vmax.xlane.f32.xlu0 %v647_v48  ;;  %v644_v49 = vpop.f32.mrf.mxu1 }
 0x284   : > { %v1231_v49 = vld [vmem:[#allocation11 + $0x8] sm:$0xff]  }
 0x285   : > { %v1111_v50 = vpop.f32.mrf.mxu1  ;;  %1131 = vmatpush3.bf16.msra.mxu1 %v1231_v49 }
 0x286   : > { %1132 = vmatprep.subr.bf16.mxu1 %v1415_v0 }
 0x287   : > { %v764_v51 = vpop.f32.mrf.mxu1 }
 0x288   : > { %v765_v52 = vadd.f32 %v764_v51, %v352_v32 }
 0x289   : > { %v1122_v53 = vpop.f32.mrf.mxu1 }
 0x28a   : > { %v770_v54 = vsel %vm359_vm3, %v765_v52, -inf }
 0x28b   : > { %771 = vmax.xlane.f32.xlu1 %v770_v54  ;;  %v767_v55 = vpop.f32.mrf.mxu1 }
 0x28d   : > { %v1123_v56 = vpop.f32.mrf.mxu1 }
 0x2fc   : > { %v408_v57 = vpop.xlane.xlu1 %407 }
 0x2fd   : > { %v409_v58 = vsub.f32 %v401_v34, %v408_v57 }
 0x2ff   : > { %v410_v59 = vmul.f32 1.442695, %v409_v58 }
 0x301   : > { %1233 = vpow2.f32 %v410_v59 }
 0x304   : > { %v526_v60 = vpop.xlane.xlu0 %525 }
 0x305   : > { %v527_v61 = vsub.f32 %v519_v40, %v526_v60 }
 0x307   : > { %v528_v62 = vmul.f32 1.442695, %v527_v61 }
 0x309   : > { %1235 = vpow2.f32 %v528_v62 }
 0x30c   : > { %v649_v63 = vpop.xlane.xlu0 %648 }
 0x30d   : > { %v650_v1 = vsub.f32 %v642_v46, %v649_v63  ;;  %v1041_v63 = vld [vmem:[%s1742_s5] ss:$0 sm:$0xff] }
 0x30e   : > { %v1234_v2 = vpop.eup %1233 }
 0x30f   : > { %v651_v3 = vmul.f32 1.442695, %v650_v1  ;;  %v412_v4 = vsel %vm359_vm3, %v1234_v2, 0.0 }
 0x310   : > { %413 = vadd.xlane.f32.xlu0 %v412_v4 }
 0x311   : > { %1237 = vpow2.f32 %v651_v3 }
 0x314   : > { %v772_v9 = vpop.xlane.xlu1 %771 }
 0x315   : > { %v773_v10 = vsub.f32 %v765_v52, %v772_v9  ;;  %v1232_v52 = vld [vmem:[#allocation11] sm:$0xff]  }
 0x316   : > { %v1236_v5 = vpop.eup %1235  ;;  %1133 = vmatpush3.bf16.msra.mxu1 %v1232_v52 }
 0x317   : > { %v530_v6 = vsel %vm359_vm3, %v1236_v5, 0.0  ;;  %v774_v11 = vmul.f32 1.442695, %v773_v10 }
 0x318   : > { %531 = vadd.xlane.f32.xlu1 %v530_v6 }
 0x319   : > { %1239 = vpow2.f32 %v774_v11 }
 0x31e   : > { %v1238_v7 = vpop.eup %1237 }
 0x31f   : > { %v653_v8 = vsel %vm359_vm3, %v1238_v7, 0.0 }
 0x320   : > { %654 = vadd.xlane.f32.xlu0 %v653_v8 }
 0x326   : > { %v1240_v13 = vpop.eup %1239 }
 0x327   : > { %v776_v17 = vsel %vm359_vm3, %v1240_v13, 0.0 }
 0x329   : > { %536 = vrot.lane.b32.xlu1 %v1617_v12, %s1425_s13  ;;  %s1693_s13 = scalar_lea.hbm %s1743_s6, %s1046_s18 }
 0x336   : > { %418 = vrot.lane.b32.xlu0 %v1619_v14, %s1426_s15  ;;  %s1337_s15 = scalar_lea.vmem %s1695_s10, 128 }
 0x337   : > { %p1338_p11 = scmp.ne.s32.totalorder %s1695_s10, %s1337_s15 }
 0x339   : > { %p1339_p1 = pnand %p1338_p11, %p1759_p0 }
 0x33a   : > { %782 = vrot.lane.b32.xlu0 %v1627_v16, %s1427_s22  ;;  %s1341_s22 = sshll.u32 %s1432_s20, 4  ;;  %s1342_s22 = int_to_ptr.vmem [resolvable:$false] %s1341_s22 }
 0x33b   : > { %p1340_p2 = pneg %p1339_p1  ;;  %p1344_p6 = scmp.lt.s32.totalorder %s1695_s10, %s1342_s22 }
 0x34d   : > { %777 = vadd.xlane.f32.xlu1 %v776_v17 }
 0x35e   : > { %659 = vrot.lane.b32.xlu1 %v1623_v15, %s1428_s23  ;;  %s1343_s23 = scalar_lea.vmem %s1342_s22, 256 }
 0x35f   : > { %p1345_p12 = scmp.lt.s32.totalorder %s1343_s23, %s1337_s15 }
 0x361   : > { %p1346_p7 = por %p1345_p12, %p1344_p6 }
 0x363   : > { %p1347_p9 = pnand %p1346_p7, %p1340_p2 }
 0x399   : > { %v414_v18 = vpop.xlane.xlu0 %413 }
 0x39a   : > { %1241 = vrcp.f32 %v414_v18 }
 0x3a1   : > { %v532_v12 = vpop.xlane.xlu1 %531 }
 0x3a2   : > { %1243 = vrcp.f32 %v532_v12 }
 0x3a5   : > { %v537_v16 = vpop.permute.xlu1 %536 }
 0x3a6   : > { %v542_v25 = vsel %vm423_vm5, %v537_v16, 0 }
 0x3a7   : > { %v1242_v19 = vpop.eup %1241 }
 0x3a8   : > { %v416_v21 = vmul.f32 %v1242_v19, %v1234_v2 }
 0x3a9   : > { %v655_v20 = vpop.xlane.xlu0 %654 }
 0x3aa   : > { %v417_v23 = vpack.c.bf16 %v416_v21, %v416_v21  ;;  %1245 = vrcp.f32 %v655_v20 }
 0x3ad   : > { %v419_v14 = vpop.permute.xlu0 %418 }
 0x3ae   : > { %v425_v22 = vsel %vm423_vm5, %v419_v14, 0 }
 0x3af   : > { %1089 = vmatpush3.bf16.msra.mxu0 %v425_v22  ;;  %v1244_v24 = vpop.eup %1243 }
 0x3b0   : > { %1100 = vmatprep.subr.bf16.mxu0 %v1415_v0  ;;  %v534_v15 = vmul.f32 %v1244_v24, %v1236_v5 }
 0x3b1   : > { %v783_v32 = vpop.permute.xlu0 %782 }
 0x3b2   : > { %1091 = vmatmul.mubr.msk.bf16.vlgmr.msra.gmra.mxu0 %vm359_vm3, %v417_v23  ;;  %v535_v26 = vpack.c.bf16 %v534_v15, %v534_v15  ;;  %v788_v34 = vsel %vm423_vm5, %v783_v32, 0 }
 0x3b3   : > { %1101 = vmatpush3.bf16.msra.mxu0 %v542_v25  ;;  %1102 = vmatprep.mubr.msk.bf16.mxu0 %vm1416_vm0, %v1415_v0 }
 0x3b4   : > { %1112 = vmatprep.subr.bf16.mxu0 %v1415_v0 }
 0x3b7   : > { %v1246_v27 = vpop.eup %1245 }
 0x3b8   : > { %v657_v29 = vmul.f32 %v1246_v27, %v1238_v7 }
 0x3ba   : > { %1103 = vmatmul.mubr.msk.bf16.vlgmr.msra.gmra.mxu0 %vm359_vm3, %v535_v26  ;;  %v658_v33 = vpack.c.bf16 %v657_v29, %v657_v29 }
 0x3bb   : > { %1114 = vmatprep.mubr.msk.bf16.mxu0 %vm1416_vm0, %v1415_v0 }
 0x3d6   : > { %v778_v28 = vpop.xlane.xlu1 %777 }
 0x3d7   : > { %1247 = vrcp.f32 %v778_v28 }
 0x3da   : > { %v660_v30 = vpop.permute.xlu1 %659 }
 0x3db   : > { %v665_v31 = vsel %vm423_vm5, %v660_v30, 0 }
 0x3dc   : > { %1113 = vmatpush3.bf16.msra.mxu0 %v665_v31 }
 0x3dd   : > { %1124 = vmatprep.subr.bf16.mxu0 %v1415_v0 }
 0x3df   : > { %1115 = vmatmul.mubr.msk.bf16.vlgmr.msra.gmra.mxu0 %vm359_vm3, %v658_v33 }
 0x3e0   : > { %1125 = vmatpush3.bf16.msra.mxu0 %v788_v34  ;;  %1126 = vmatprep.mubr.msk.bf16.mxu0 %vm1416_vm0, %v1415_v0 }
 0x3e4   : > { %v1248_v35 = vpop.eup %1247 }
 0x3e5   : > { %v780_v36 = vmul.f32 %v1248_v35, %v1240_v13 }
 0x3e7   : > { %v781_v37 = vpack.c.bf16 %v780_v36, %v780_v36 }
 0x3e9   : > { %1127 = vmatmul.mubr.msk.bf16.vlgmr.msra.gmra.mxu0 %vm359_vm3, %v781_v37 }
 0x472   : > { %v461_v38 = vpop.f32.mrf.mxu0 }
 0x473   : > { %v467_v39 = vpack.c.bf16 %v461_v38, %v461_v38 }
 0x474   : > { %v1092_v40 = vpop.f32.mrf.mxu0 }
 0x475   : > { %469 = vst.msk [vmem:[#allocation3] sm:$0xf] %vm468_vm6, %v467_v39 }
 0x476   : > { %v464_v41 = vpop.f32.mrf.mxu0 }
 0x478   : > { %v1093_v42 = vpop.f32.mrf.mxu0 }
 0x47a   : > { %v578_v43 = vpop.f32.mrf.mxu0 }
 0x47b   : > { %v1049_v44 = vpack.c.bf16 %v578_v43, %v578_v43 }
 0x47c   : > { %v1104_v45 = vpop.f32.mrf.mxu0 }
 0x47d   : > { %588 = vrot.lane.b32.xlu1 %v1049_v44, %s1429_s29 }
 0x47e   : > { %v581_v46 = vpop.f32.mrf.mxu0 }
 0x480   : > { %v1105_v47 = vpop.f32.mrf.mxu0 }
 0x49f   : > { %v701_v48 = vpop.f32.mrf.mxu0 }
 0x4a0   : > { %v1050_v50 = vpack.c.bf16 %v701_v48, %v701_v48 }
 0x4a1   : > { %v1116_v51 = vpop.f32.mrf.mxu0 }
 0x4a2   : > { %711 = vrot.lane.b32.xlu0 %v1050_v50, %s1430_s7 }
 0x4a3   : > { %v704_v53 = vpop.f32.mrf.mxu0 }
 0x4a5   : > { %v1117_v54 = vpop.f32.mrf.mxu0 }
 0x4a9   : > { %v824_v55 = vpop.f32.mrf.mxu0 }
 0x4aa   : > { %v1051_v56 = vpack.c.bf16 %v824_v55, %v824_v55 }
 0x4ab   : > { %v1128_v57 = vpop.f32.mrf.mxu0 }
 0x4ac   : > { %834 = vrot.lane.b32.xlu1 %v1051_v56, %s1431_s14 }
 0x4ad   : > { %v827_v58 = vpop.f32.mrf.mxu0 }
 0x4af   : > { %v1129_v59 = vpop.f32.mrf.mxu0 }
 0x4ef   : > { %v589_v60 = vpop.permute.xlu1 %588 }
 0x4f0   : > { %592 = vst.msk [vmem:[#allocation3] sm:$0xf] %vm591_vm7, %v589_v60 }
 0x514   : > { %v712_v61 = vpop.permute.xlu0 %711 }
 0x515   : > { %715 = vst.msk [vmem:[#allocation3] sm:$0xf] %vm714_vm8, %v712_v61 }
 0x51e   : > { %v835_v0 = vpop.permute.xlu1 %834 }
 0x51f   : > { %838 = vst.msk [vmem:[#allocation3] sm:$0xf] %vm837_vm9, %v835_v0 }
 0x526   : > { %v839_v62 = vld [vmem:[#allocation3] sm:$0xf] }
 0x527   : > { %1135 = vmatmul.mubr.msk.bf16.vlgmr.msra.gmra.mxu1 %vm300_vm1, %v839_v62 }
 0x5e7   : > { %v900_v1 = vpop.f32.mrf.mxu1 }
 0x5e8   : > { %v901_v2 = vadd.f32 %v1041_v63, %v900_v1 }
 0x5e9   : > { %v1136_v3 = vpop.f32.mrf.mxu1 }
 0x5ea   : > { %906 = vst.msk [vmem:[%s273_s11] sm:$0xff] %vm300_vm1, %v901_v2 }
 0x5eb   : > { %v903_v4 = vpop.f32.mrf.mxu1 }
 0x5ec   : > { %1350 = shalt.err (!%p1347_p9)
}
 0x5ed   : > { %s1351_s29 = scalar_lea.hbm %s1693_s13, 128  ;;  %s1355_s14 = scalar_lea.hbm %s1743_s6, 256 }
 0x5ee   : > { %p1352_p13 = scmp.ne.s32.totalorder %s1693_s13, %s1351_s29  ;;  %p1356_p4 = scmp.lt.s32.totalorder %s1693_s13, %s1743_s6 }
 0x5ef   : > { %p1357_p8 = scmp.lt.s32.totalorder %s1355_s14, %s1351_s29 }
 0x5f0   : > { %p1353_p5 = pnand %p1352_p13, %p1759_p0 }
 0x5f1   : > { %p1358_p3 = por %p1357_p8, %p1356_p4 }
 0x5f2   : > { %p1354_p10 = pneg %p1353_p5 }
 0x5f4   : > { %p1359_p11 = pnand %p1358_p3, %p1354_p10 }
 0x5f6   : > { %1362 = shalt.err (!%p1359_p11)
}
 0x5f7   : > { %1148 = dma.vmem_to_hbm [thread:$0]  (%p1759_p0), %s1695_s10, 128, %s1693_s13, %s908_s0   ;;  %v1137_v5 = vpop.f32.mrf.mxu1 }
 0x5f8 PF: > { %s933_s18 = sand.u32 1, %s1395_s24   ;;  %p1760_p1 = scmp.ne.s32.totalorder %s1749_s30, 0 }
 0x5f9   : > { %p1761_p2 = scmp.ge.s32.totalorder %s1407_s27, 2  ;;  %s934_s11 = scalar_lea.sflag [#allocation8], %s933_s18 }
 0x5fb   : > { %p1162_p6 = pnand %p1761_p2, %p1760_p1 }
 0x5fd   : > { %p1163_p12 = pneg %p1162_p6 }
 0x5ff   : > { %1390 = dma.done.wait (%p1163_p12), %s934_s11, 128  }
 0x600   : > { %1392 = vsyncadd (%p1163_p12), %s934_s11, 4294967168  ;;  %p24_p7 = scmp.ge.s32.totalorder %s1543_s21, 4   ;;  %s1762_s24 = smov %s1399_s25 }
 0x601   : > { %s1763_s25 = smov %s1403_s26  ;;  %s1764_s26 = smov %s1559_s8 }
 0x602   : > { %s1765_s27 = smov %s1543_s21  ;;  %26 = sbr.rel (!%p24_p7) target bundleno = 11 (0xb), region = 93 }
 0x607   :  { %939 = vsyncpa [#allocation7], 1 }
 0x608   :  { %941 = vsyncpa [#allocation7 + $0x1], 1 }
 0x609   :  { %942 = vsyncpa [#allocation10], 1 }
 0x60a   :  { %943 = vsyncpa [#allocation8], 1 }
 0x60b   :  { %945 = vsyncpa [#allocation8 + $0x1], 1 }

</bundles_post_ra>
